<compile_context>
chip_gen: v7x
topology: tpu7x:2x2x1
jax: 0.10.0
libtpu: 0.0.40
codegen_flags: <defaults>
</compile_context>

<pallas_src>
import jax
import jax.numpy as jnp
from jax import lax
from jax.experimental import pallas as pl
from jax.experimental.pallas import tpu as pltpu

BN_EPS = 1e-5


def _round_up(x, m):
    return ((x + m - 1) // m) * m


def pre_tf_bn_kernel(x_ref, w_ref, b_ref, gamma_ref, beta_ref, o_ref, acc_ref):
    k = pl.program_id(1)

    @pl.when(k == 0)
    def _():
        acc_ref[...] = jnp.zeros_like(acc_ref)

    # Partial matmul on this K slab; weight is (tn, tk) in PyTorch orientation,
    # contract x's last dim against w's last dim (no transpose materialized).
    acc_ref[...] += lax.dot_general(
        x_ref[...], w_ref[...],
        dimension_numbers=(((1,), (1,)), ((), ())),
        preferred_element_type=jnp.float32)

    @pl.when(k == pl.num_programs(1) - 1)
    def _():
        y = acc_ref[...] + b_ref[...]                     # (n, tn), f32
        n = y.shape[0]
        inv_n = 1.0 / n
        # One-pass biased batch statistics (sum, sum of squares), all in f32.
        col_sum = jnp.sum(y, axis=0, keepdims=True)
        col_sumsq = jnp.sum(y * y, axis=0, keepdims=True)
        mean = col_sum * inv_n
        var = jnp.maximum(col_sumsq * inv_n - mean * mean, 0.0)
        inv_std = lax.rsqrt(var + BN_EPS)
        # Fold BN into a single scale/shift -> 2 elementwise passes over (n, tn).
        scale = gamma_ref[...] * inv_std
        shift = beta_ref[...] - mean * scale
        o_ref[...] = (y * scale + shift).astype(o_ref.dtype)


def pre_tensor_fusion_bn(x, weight, bias, gamma, beta, *, tn=None, tk=None):
    """x: (N, input_dim); weight: (out_dim, input_dim) in PyTorch convention."""
    n, input_dim = x.shape
    out_dim, in_dim_w = weight.shape
    assert in_dim_w == input_dim

    # Pad feature dims up to lane width so every block is 128-lane dense.
    in_p = _round_up(input_dim, 128)
    out_p = _round_up(out_dim, 128)

    if tn is None:
        # 256-wide N tiles feed the v6e/v7x MXU; keep >=2 blocks so the
        # "parallel" axis can shard across TensorCores. 128 otherwise (v5e native).
        tn = 256 if (out_p % 256 == 0 and out_p >= 512) else 128
        tn = min(tn, out_p)
    assert out_p % tn == 0

    if tk is None:
        for cand in (512, 256, 128):
            if in_p % cand == 0:
                tk = cand
                break
    assert in_p % tk == 0

    # Zero-pad (safe: padded K columns contribute 0 to the dot; padded output
    # columns get gamma=1 / beta=0 and are sliced off afterwards).
    if in_p != input_dim:
        x = jnp.pad(x, ((0, 0), (0, in_p - input_dim)))
        weight = jnp.pad(weight, ((0, 0), (0, in_p - input_dim)))
    if out_p != out_dim:
        weight = jnp.pad(weight, ((0, out_p - out_dim), (0, 0)))
        bias = jnp.pad(bias, (0, out_p - out_dim))
        gamma = jnp.pad(gamma, (0, out_p - out_dim), constant_values=1.0)
        beta = jnp.pad(beta, (0, out_p - out_dim))

    b2 = bias.reshape(1, out_p)
    g2 = gamma.reshape(1, out_p)
    be2 = beta.reshape(1, out_p)

    grid = (out_p // tn, in_p // tk)

    # VMEM budget: double-buffered x slab + W tile + small vectors + resident
    # output block + f32 accumulator scratch.
    est = (2 * n * tk * x.dtype.itemsize
           + 2 * tn * tk * weight.dtype.itemsize
           + 3 * 2 * tn * 4
           + 2 * n * tn * x.dtype.itemsize
           + n * tn * 4)
    vmem_limit = int(min(max(2 * est, 24 * 2**20), 48 * 2**20))

    out = pl.pallas_call(
        pre_tf_bn_kernel,
        out_shape=jax.ShapeDtypeStruct((n, out_p), x.dtype),
        grid_spec=pltpu.PrefetchScalarGridSpec(
            num_scalar_prefetch=0,
            grid=grid,
            in_specs=[
                pl.BlockSpec((n, tk), lambda j, k: (0, k)),    # x: full batch, K slab
                pl.BlockSpec((tn, tk), lambda j, k: (j, k)),   # weight tile (out, in)
                pl.BlockSpec((1, tn), lambda j, k: (0, j)),    # bias tile
                pl.BlockSpec((1, tn), lambda j, k: (0, j)),    # gamma tile
                pl.BlockSpec((1, tn), lambda j, k: (0, j)),    # beta tile
            ],
            out_specs=pl.BlockSpec((n, tn), lambda j, k: (0, j)),
            scratch_shapes=[pltpu.VMEM((n, tn), jnp.float32)],
        ),
        compiler_params=pltpu.CompilerParams(
            dimension_semantics=("parallel", "arbitrary"),
            vmem_limit_bytes=vmem_limit,
        ),
    )(x, weight, b2, g2, be2)

    if out_p != out_dim:
        out = out[:, :out_dim]
    return out


def reference(x, weight, bias, gamma, beta):
    y = x @ weight.T + bias
    mean = jnp.mean(y, axis=0, keepdims=True)
    var = jnp.mean((y - mean) ** 2, axis=0, keepdims=True)
    return (y - mean) / jnp.sqrt(var + BN_EPS) * gamma + beta


if __name__ == "__main__":
    key = jax.random.PRNGKey(0)
    # Small shapes that still exercise K tiling (3 K steps), out_dim tiling
    # (2 parallel blocks), and both feature-padding paths.
    batch, input_dim, out_dim = 16, 300, 200

    kx, kw, kb = jax.random.split(key, 3)
    x = jax.random.normal(kx, (batch, input_dim), dtype=jnp.float32)

    bound = 1.0 / (input_dim ** 0.5)
    weight = jax.random.uniform(kw, (out_dim, input_dim), minval=-bound, maxval=bound,
                                dtype=jnp.float32)
    bias = jax.random.uniform(kb, (out_dim,), minval=-bound, maxval=bound,
                              dtype=jnp.float32)
    gamma = jnp.ones((out_dim,), dtype=jnp.float32)   # BatchNorm1d affine weight
    beta = jnp.zeros((out_dim,), dtype=jnp.float32)   # BatchNorm1d affine bias

    out = pre_tensor_fusion_bn(x, weight, bias, gamma, beta)
    out = jax.block_until_ready(out)

    ref = reference(x, weight, bias, gamma, beta)
    assert out.shape == (batch, out_dim)
    assert jnp.allclose(out, ref, atol=1e-4, rtol=1e-4), float(jnp.max(jnp.abs(out - ref)))
    print("KERNEL_OK")
</pallas_src>

<mosaic_0001>
module attributes {stable_mosaic.version = 11 : i64} {
  func.func @pre_tf_bn_kernel(%arg0: i32, %arg1: i32, %arg2: memref<16x128xf32, #tpu.memory_space<vmem>>, %arg3: memref<128x128xf32, #tpu.memory_space<vmem>>, %arg4: memref<1x128xf32, #tpu.memory_space<vmem>>, %arg5: memref<1x128xf32, #tpu.memory_space<vmem>>, %arg6: memref<1x128xf32, #tpu.memory_space<vmem>>, %arg7: memref<16x128xf32, #tpu.memory_space<vmem>>, %arg8: memref<16x128xf32, #tpu.memory_space<vmem>>) attributes {dimension_semantics = [#tpu.dimension_semantics<parallel>, #tpu.dimension_semantics<arbitrary>], iteration_bounds = array<i64: 2, 3>, scalar_prefetch = 0 : i64, scratch_operands = 1 : i64, tpu.core_type = #tpu.core_type<tc>, window_params = [{transform_indices = @transform_0, window_bounds = array<i64: 16, 128>}, {transform_indices = @transform_1, window_bounds = array<i64: 128, 128>}, {transform_indices = @transform_2, window_bounds = array<i64: 1, 128>}, {transform_indices = @transform_3, window_bounds = array<i64: 1, 128>}, {transform_indices = @transform_4, window_bounds = array<i64: 1, 128>}, {transform_indices = @transform_5, window_bounds = array<i64: 16, 128>}]} {
    %c0_i32 = arith.constant 0 : i32
    %0 = arith.cmpi eq, %arg1, %c0_i32 : i32
    %1 = arith.extui %0 : i1 to i32
    %c0_i32_0 = arith.constant 0 : i32
    %2 = arith.cmpi ne, %1, %c0_i32_0 : i32
    scf.if %2 {
      %cst_9 = arith.constant 0.000000e+00 : f32
      %12 = vector.broadcast %cst_9 : f32 to vector<16x128xf32>
      %c0_10 = arith.constant 0 : index
      %c0_11 = arith.constant 0 : index
      %13 = vector.load %arg8[%c0_10, %c0_11] : memref<16x128xf32, #tpu.memory_space<vmem>>, vector<16x128xf32>
      tpu.vector_store %arg8[%c0_10, %c0_11], %12 {strides = array<i32>} : memref<16x128xf32, #tpu.memory_space<vmem>>, vector<16x128xf32>,
    } else {
    }
    %c0 = arith.constant 0 : index
    %c0_1 = arith.constant 0 : index
    %3 = vector.load %arg8[%c0, %c0_1] : memref<16x128xf32, #tpu.memory_space<vmem>>, vector<16x128xf32>
    %c0_2 = arith.constant 0 : index
    %c0_3 = arith.constant 0 : index
    %4 = vector.load %arg2[%c0_2, %c0_3] : memref<16x128xf32, #tpu.memory_space<vmem>>, vector<16x128xf32>
    %c0_4 = arith.constant 0 : index
    %c0_5 = arith.constant 0 : index
    %5 = vector.load %arg3[%c0_4, %c0_5] : memref<128x128xf32, #tpu.memory_space<vmem>>, vector<128x128xf32>
    %cst = arith.constant dense<0.000000e+00> : vector<16x128xf32>
    %6 = tpu.matmul %4, %5, %cst {dimension_numbers = #tpu.dot_dimension_numbers<[1], [1], [0], [0], [0, 0, 1, 0], [], []>} : vector<16x128xf32>, vector<128x128xf32>, vector<16x128xf32> -> vector<16x128xf32>
    %7 = arith.addf %3, %6 : vector<16x128xf32>
    %c0_6 = arith.constant 0 : index
    %c0_7 = arith.constant 0 : index
    %8 = vector.load %arg8[%c0_6, %c0_7] : memref<16x128xf32, #tpu.memory_space<vmem>>, vector<16x128xf32>
    tpu.vector_store %arg8[%c0_6, %c0_7], %7 {strides = array<i32>} : memref<16x128xf32, #tpu.memory_space<vmem>>, vector<16x128xf32>,
    %c2_i32 = arith.constant 2 : i32
    %9 = arith.cmpi eq, %arg1, %c2_i32 : i32
    %10 = arith.extui %9 : i1 to i32
    %c0_i32_8 = arith.constant 0 : i32
    %11 = arith.cmpi ne, %10, %c0_i32_8 : i32
    scf.if %11 {
      %c0_9 = arith.constant 0 : index
      %c0_10 = arith.constant 0 : index
      %12 = vector.load %arg8[%c0_9, %c0_10] : memref<16x128xf32, #tpu.memory_space<vmem>>, vector<16x128xf32>
      %c0_11 = arith.constant 0 : index
      %c0_12 = arith.constant 0 : index
      %13 = vector.load %arg4[%c0_11, %c0_12] : memref<1x128xf32, #tpu.memory_space<vmem>>, vector<1x128xf32>
      %14 = vector.broadcast %13 : vector<1x128xf32> to vector<16x128xf32>
      %15 = arith.addf %12, %14 : vector<16x128xf32>
      %cst_13 = arith.constant dense<0.000000e+00> : vector<128xf32>
      %16 = vector.multi_reduction <add>, %15, %cst_13 [0] : vector<16x128xf32> to vector<128xf32>
      %17 = vector.shape_cast %16 : vector<128xf32> to vector<1x128xf32>
      %18 = arith.mulf %15, %15 : vector<16x128xf32>
      %cst_14 = arith.constant dense<0.000000e+00> : vector<128xf32>
      %19 = vector.multi_reduction <add>, %18, %cst_14 [0] : vector<16x128xf32> to vector<128xf32>
      %20 = vector.shape_cast %19 : vector<128xf32> to vector<1x128xf32>
      %cst_15 = arith.constant 6.250000e-02 : f32
      %21 = vector.broadcast %cst_15 : f32 to vector<1x128xf32>
      %22 = arith.mulf %17, %21 : vector<1x128xf32>
      %cst_16 = arith.constant 6.250000e-02 : f32
      %23 = vector.broadcast %cst_16 : f32 to vector<1x128xf32>
      %24 = arith.mulf %20, %23 : vector<1x128xf32>
      %25 = arith.mulf %22, %22 : vector<1x128xf32>
      %26 = arith.subf %24, %25 : vector<1x128xf32>
      %cst_17 = arith.constant 0.000000e+00 : f32
      %27 = vector.broadcast %cst_17 : f32 to vector<1x128xf32>
      %28 = arith.maximumf %26, %27 : vector<1x128xf32>
      %cst_18 = arith.constant 9.99999974E-6 : f32
      %29 = vector.broadcast %cst_18 : f32 to vector<1x128xf32>
      %30 = arith.addf %28, %29 : vector<1x128xf32>
      %31 = math.rsqrt %30 : vector<1x128xf32>
      %c0_19 = arith.constant 0 : index
      %c0_20 = arith.constant 0 : index
      %32 = vector.load %arg5[%c0_19, %c0_20] : memref<1x128xf32, #tpu.memory_space<vmem>>, vector<1x128xf32>
      %33 = arith.mulf %32, %31 : vector<1x128xf32>
      %c0_21 = arith.constant 0 : index
      %c0_22 = arith.constant 0 : index
      %34 = vector.load %arg6[%c0_21, %c0_22] : memref<1x128xf32, #tpu.memory_space<vmem>>, vector<1x128xf32>
      %35 = arith.mulf %22, %33 : vector<1x128xf32>
      %36 = arith.subf %34, %35 : vector<1x128xf32>
      %37 = vector.broadcast %33 : vector<1x128xf32> to vector<16x128xf32>
      %38 = arith.mulf %15, %37 : vector<16x128xf32>
      %39 = vector.broadcast %36 : vector<1x128xf32> to vector<16x128xf32>
      %40 = arith.addf %38, %39 : vector<16x128xf32>
      %c0_23 = arith.constant 0 : index
      %c0_24 = arith.constant 0 : index
      %41 = vector.load %arg7[%c0_23, %c0_24] : memref<16x128xf32, #tpu.memory_space<vmem>>, vector<16x128xf32>
      tpu.vector_store %arg7[%c0_23, %c0_24], %40 {strides = array<i32>} : memref<16x128xf32, #tpu.memory_space<vmem>>, vector<16x128xf32>,
    } else {
    }
    return
  }
  func.func @transform_0(%arg0: i32, %arg1: i32) -> (i32, i32) {
    %c0_i32 = arith.constant 0 : i32
    %c0_i32_0 = arith.constant 0 : i32
    return %c0_i32, %arg1 : i32, i32
  }
  func.func @transform_1(%arg0: i32, %arg1: i32) -> (i32, i32) {
    %c0_i32 = arith.constant 0 : i32
    return %arg0, %arg1 : i32, i32
  }
  func.func @transform_2(%arg0: i32, %arg1: i32) -> (i32, i32) {
    %c0_i32 = arith.constant 0 : i32
    %c0_i32_0 = arith.constant 0 : i32
    return %c0_i32, %arg0 : i32, i32
  }
  func.func @transform_3(%arg0: i32, %arg1: i32) -> (i32, i32) {
    %c0_i32 = arith.constant 0 : i32
    %c0_i32_0 = arith.constant 0 : i32
    return %c0_i32, %arg0 : i32, i32
  }
  func.func @transform_4(%arg0: i32, %arg1: i32) -> (i32, i32) {
    %c0_i32 = arith.constant 0 : i32
    %c0_i32_0 = arith.constant 0 : i32
    return %c0_i32, %arg0 : i32, i32
  }
  func.func @transform_5(%arg0: i32, %arg1: i32) -> (i32, i32) {
    %c0_i32 = arith.constant 0 : i32
    %c0_i32_0 = arith.constant 0 : i32
    return %c0_i32, %arg0 : i32, i32
  }
}

</mosaic_0001>

<bundles_post_ra>
// kernel: tpu_custom_call.1
= control target key start
LH: loop header
LB: loop body
LE: loop exit
PB: predicated region body
PF: predicated region fallthrough
CT: control target
= control target key end

     0   :  { %s1582_s0 = inlined_call_operand.hbm [shape: f32[16,384], index: 0, kind: input, shape index: {}]   ;;  %s1583_s1 = inlined_call_operand.hbm [shape: f32[256,384], index: 1, kind: input, shape index: {}]   ;;  %s1584_s2 = inlined_call_operand.vmem [shape: f32[1,256], index: 2, kind: input, shape index: {}]   ;;  %s1585_s3 = inlined_call_operand.vmem [shape: f32[1,256], index: 3, kind: input, shape index: {}]   ;;  %s1586_s4 = inlined_call_operand.vmem [shape: f32[1,256], index: 4, kind: input, shape index: {}]   ;;  %s1587_s5 = inlined_call_operand.hbm [shape: f32[16,256], index: 5, kind: output, shape index: {}]  }
   0x1   :  { %1603 = sst [smem:[#allocation18_spill]] %s1582_s0 }
   0x2   :  { %1604 = sst [smem:[#allocation19_spill]] %s1583_s1 }
   0x3   :  { %1605 = sst [smem:[#allocation20_spill]] %s1585_s3 }
   0x4   :  { %1606 = sst [smem:[#allocation21_spill]] %s1586_s4 }
   0x5   :  { %1607 = sst [smem:[#allocation22_spill]] %s1587_s5 }
   0x6   :  { %10 = vsyncpa [#allocation4], 0 }
   0x7   :  { %12 = vsyncpa [#allocation4 + $0x1], 0 }
   0x8   :  { %13 = vsyncpa [#allocation7], 0 }
   0x9   :  { %15 = vsyncpa [#allocation7 + $0x1], 0 }
   0xa   :  { %16 = vsyncpa [#allocation5], 0 }
   0xb   :  { %18 = vsyncpa [#allocation5 + $0x1], 0  ;;  %s1155_s18 = smov 0   ;;  %s1157_s19 = smov 0  }
   0xc   :  { %s1159_s20 = smov 0   ;;  %s1161_s21 = smov 0  }
   0xd   :  { %s1163_s22 = smov 0   ;;  %s1165_s23 = smov 0  }
   0xe   :  { %s1167_s24 = smov 0   ;;  %s1169_s25 = smov 0  }
   0xf   :  { %s1171_s26 = smov 0   ;;  %s1173_s27 = smov 0  }
  0x10   :  { %s1175_s28 = smov 0   ;;  %s1177_s29 = smov 0  }
  0x11   :  { %s1179_s30 = smov 0   ;;  %s1181_s6 = smov 0  }
  0x12 LB: > { %1608 = sst [smem:[#allocation12_spill]] %s1093_s26  ;;  %s656_s7 = sadd.s32 4294967295, %s1113_s6   ;;  %s1113_s6 = sphi %s1181_s6, %s24_s6   ;;  %s1109_s30 = sphi %s1179_s30, %s1655_s30   ;;  %s1105_s29 = sphi %s1177_s29, %s1667_s29   ;;  %s1101_s28 = sphi %s1175_s28, %s1666_s28   ;;  %s1097_s27 = sphi %s1173_s27, %s1665_s27   ;;  %s1093_s26 = sphi %s1171_s26, %s1652_s26   ;;  %s1089_s25 = sphi %s1169_s25, %s1664_s25   ;;  %s1085_s24 = sphi %s1167_s24, %s1663_s24   ;;  %s1081_s23 = sphi %s1165_s23, %s1662_s23   ;;  %s1077_s22 = sphi %s1163_s22, %s1661_s22   ;;  %s1073_s21 = sphi %s1161_s21, %s1660_s21   ;;  %s1069_s20 = sphi %s1159_s20, %s1659_s20   ;;  %s1065_s19 = sphi %s1157_s19, %s1658_s19   ;;  %s1061_s18 = sphi %s1155_s18, %s1657_s18  }
  0x13   : > { %1609 = sst [smem:[#allocation13_spill]] %s1097_s27  ;;  %s33_s8 = sadd.s32 1, %s1105_s29 }
  0x14   : > { %1610 = sst [smem:[#allocation14_spill]] %s1109_s30  ;;  %p1225_p0 = scmp.ge.s32.totalorder %s33_s8, 3 }
  0x15   : > { %s43_s10 = sadd.s32 1, %s1093_s26  ;;  %p50_p1 = scmp.ne.s32.totalorder %s1093_s26, %s1089_s25 }
  0x16   : > { %p1591_p2 = scmp.eq.s32.totalorder %s1113_s6, 0  ;;  %s1669_s8 = smov (%p1225_p0, %s33_s8), 0 }
  0x17   : > { %1612 = sst [smem:[#allocation15_spill]] %s1669_s8  ;;  %p56_p4 = scmp.ne.s32.totalorder %s1089_s25, %s1085_s24 }
  0x18   : > { %p1239_p3 = por %p1591_p2, %p50_p1  ;;  %s1246_s12 = ssub.s32 %s1105_s29, %s1669_s8 }
  0x19   : > { %p1248_p5 = scmp.eq.s32.totalorder %s656_s7, 0  ;;  %p41_p6 = scmp.eq.s32.totalorder %s1246_s12, 0 }
  0x1a   : > { %p1253_p7 = scmp.eq.s32.totalorder %s656_s7, 5  ;;  %p1590_p9 = scmp.lt.s32.totalorder %s1113_s6, 6 }
  0x1b   : > { %s1614_s13 = scalar_select %p1248_p5, 1, 0 }
  0x1c   : > { %s1615_s14 = scalar_select %p1253_p7, 1, 0 }
  0x1d   : > { %p1259_p8 = por %p1248_p5, %p56_p4  ;;  %s212_s17 = sand.u32 1, %s1093_s26  }
  0x1e   : > { %s1264_s16 = scalar_select %p41_p6, %s1093_s26, %s43_s10  }
  0x1f   : > { %s1616_s15 = scalar_select %p1259_p8, 1, 0 }
  0x20   : > { %1617 = sst [smem:[#allocation16_spill]] %s1264_s16  ;;  %s660_s24 = sshll.u32 %s212_s17, 4 }
  0x21   : > { %s661_s8 = sshll.u32 %s1105_s29, 7  ;;  %s1618_s0 = sld [smem:[#allocation18_spill]] }
  0x22   : > { %s216_s7 = scalar_lea.vmem [#allocation3], %s660_s24  ;;  %p1280_p10 = pnand %p1590_p9, %p1239_p3 }
  0x23   : > { %s222_s3 = sshll.u32 %s216_s7, 4  ;;  %s1284_s16 = scalar_lea.sflag [#allocation4], %s212_s17  ;;  %s1274_s3 = int_to_ptr.vmem [resolvable:$true] %s222_s3 }
  0x24   : > { %p905_p12 = pneg %p1280_p10 }
  0x27   : > { %s1272_s4 = scalar_lea.hbm %s1618_s0, %s661_s8  ;;  %s908_s11 = scalar_lea.hbm %s1618_s0, 768 }
  0x28   : > { %s903_s5 = scalar_lea.hbm %s1272_s4, 256  ;;  %p909_p3 = scmp.lt.u32.totalorder %s1272_s4, %s1618_s0 }
  0x29   : > { %p904_p11 = scmp.ne.s32.totalorder %s1272_s4, %s903_s5  ;;  %p910_p4 = scmp.lt.u32.totalorder %s908_s11, %s903_s5 }
  0x2a   : > { %p912_p9 = scmp.lt.u32.totalorder %s903_s5, %s1272_s4 }
  0x2b   : > { %p906_p13 = pnand %p905_p12, %p904_p11  ;;  %p911_p6 = por %p910_p4, %p909_p3 }
  0x2d   : > { %p907_p1 = pneg %p906_p13  ;;  %p913_p2 = por %p912_p9, %p911_p6 }
  0x2f   : > { %p914_p8 = pnand %p913_p2, %p907_p1 }
  0x31   : > { %917 = shalt.err (!%p914_p8)
}
  0x32   : > { %s918_s17 = scalar_lea.vmem %s1274_s3, 256  ;;  %s1115_s27 = smov [#allocation3]  }
  0x33   : > { %p919_p11 = scmp.ne.s32.totalorder %s1274_s3, %s918_s17  ;;  %s923_s8 = sshll.u32 %s1115_s27, 4  ;;  %s924_s8 = int_to_ptr.vmem [resolvable:$false] %s923_s8 }
  0x34   : > { %s925_s24 = scalar_lea.vmem %s924_s8, 512  ;;  %p926_p5 = scmp.lt.s32.totalorder %s1274_s3, %s924_s8 }
  0x35   : > { %p921_p13 = pnand %p919_p11, %p905_p12  ;;  %p927_p3 = scmp.lt.s32.totalorder %s925_s24, %s918_s17 }
  0x37   : > { %p922_p7 = pneg %p921_p13  ;;  %p928_p4 = por %p927_p3, %p926_p5 }
  0x39   : > { %p929_p9 = pnand %p928_p4, %p922_p7 }
  0x3b   : > { %932 = shalt.err (!%p929_p9)
}
  0x3c   : > { %s1594_s5 = smov 384   ;;  %s1595_s11 = smov 128  }
  0x3d   : > { %s1596_s7 = smov 8   ;;  %p666_p2 = scmp.ge.s32.totalorder %s1113_s6, 1 }
  0x3e   : > { %772 = dma.hbm_to_vmem [thread:$0]  (!%p1280_p10), %s1272_s4, 256, %s1274_s3, %s1284_s16, %s1594_s5, %s1595_s11, %s1596_s7  }
  0x3f   : > { %p271_p5 = scmp.lt.s32.totalorder %s1113_s6, 7  ;;  %s657_s27 = sadd.s32 4294967294, %s1113_s6  }
  0x40   : > { %s36_s8 = sadd.s32 1, %s1109_s30  ;;  %s71_s24 = sadd.s32 1, %s1081_s23 }
  0x41   : > { %p1317_p7 = pnand %p666_p2, %p271_p5  ;;  %s1671_s8 = smov (!%p1225_p0, %s36_s8), %s1109_s30 }
  0x42   : > { %p78_p8 = scmp.ne.s32.totalorder %s1081_s23, %s1077_s22  ;;  %p84_p10 = scmp.ne.s32.totalorder %s1077_s22, %s1073_s21 }
  0x43   : > { %p38_p12 = scmp.ge.s32.totalorder %s1671_s8, 2  ;;  %s175_s3 = sadd.s32 1, %s1069_s20 }
  0x44   : > { %p1621_p1 = scmp.eq.s32.totalorder %s1113_s6, 0  ;;  %p1623_p11 = scmp.ne.s32.totalorder %s1614_s13, 0 }
  0x45   : > { %s1673_s8 = smov (%p38_p12, %s1671_s8), 0  ;;  %p185_p0 = scmp.ne.s32.totalorder %s1069_s20, %s1065_s19 }
  0x46   : > { %p1334_p6 = por %p78_p8, %p1621_p1  ;;  %p1340_p13 = por %p84_p10, %p1623_p11 }
  0x47   : > { %1625 = sst [smem:[#allocation17_spill]] %s1673_s8  ;;  %p191_p3 = scmp.ne.s32.totalorder %s1065_s19, %s1061_s18 }
  0x48   : > { %s1624_s16 = scalar_select %p1340_p13, 1, 0 }
  0x49   : > { %s66_s21 = ssub.s32 %s1109_s30, %s1673_s8  ;;  %p192_p4 = scmp.eq.s32.totalorder %s657_s27, 5 }
  0x4a   : > { %s68_s9 = sor.u32 %s66_s21, %s1246_s12  ;;  %p173_p9 = scmp.eq.s32.totalorder %s66_s21, 0 }
  0x4b   : > { %p69_p2 = scmp.eq.s32.totalorder %s68_s9, 0  ;;  %p1626_p5 = scmp.ne.s32.totalorder %s1615_s14, 0 }
  0x4c   : > { %s1360_s10 = scalar_select %p173_p9, %s1069_s20, %s175_s3  }
  0x4d   : > { %p1355_p8 = por %p1626_p5, %p185_p0  ;;  %p1365_p10 = por %p192_p4, %p191_p3 }
  0x4e   : > { %s1363_s5 = scalar_select %p69_p2, %s1081_s23, %s71_s24  }
  0x4f   : > { %s1627_s13 = scalar_select %p1355_p8, 1, 0 }
  0x50   : > { %s1628_s11 = scalar_select %p1365_p10, 1, 0 }
  0x51   : > { %s232_s7 = sand.u32 1, %s1081_s23   ;;  %s762_s8 = smul.u32 48, %s1109_s30 }
  0x52   : > { %s662_s0 = sshll.u32 %s232_s7, 7  ;;  %p1629_p12 = scmp.lt.s32.totalorder %s1113_s6, 6 }
  0x53   : > { %s236_s27 = scalar_lea.vmem [#allocation6], %s662_s0  ;;  %s242_s3 = sadd.s32 %s1105_s29, %s762_s8 }
  0x54   : > { %s245_s12 = sshll.u32 %s236_s27, 4  ;;  %p1375_p1 = pnand %p1629_p12, %p1334_p6  ;;  %s1380_s12 = int_to_ptr.vmem [resolvable:$true] %s245_s12 }
  0x55   : > { %s665_s24 = sshll.u32 %s242_s3, 7  ;;  %s1631_s1 = sld [smem:[#allocation19_spill]] }
  0x56   : > { %s1387_s0 = scalar_lea.sflag [#allocation7], %s232_s7  ;;  %p935_p11 = pneg %p1375_p1 }
  0x5b   : > { %s1385_s26 = scalar_lea.hbm %s1631_s1, %s665_s24  ;;  %s938_s3 = scalar_lea.hbm %s1631_s1, 12288 }
  0x5c   : > { %s933_s4 = scalar_lea.hbm %s1385_s26, 2048  ;;  %p939_p4 = scmp.lt.u32.totalorder %s1385_s26, %s1631_s1 }
  0x5d   : > { %p934_p6 = scmp.ne.s32.totalorder %s1385_s26, %s933_s4  ;;  %p940_p9 = scmp.lt.u32.totalorder %s938_s3, %s933_s4 }
  0x5e   : > { %p942_p5 = scmp.lt.u32.totalorder %s933_s4, %s1385_s26 }
  0x5f   : > { %p936_p0 = pnand %p935_p11, %p934_p6  ;;  %p941_p2 = por %p940_p9, %p939_p4 }
  0x61   : > { %p937_p3 = pneg %p936_p0  ;;  %p943_p12 = por %p942_p5, %p941_p2 }
  0x63   : > { %p944_p10 = pnand %p943_p12, %p937_p3 }
  0x65   : > { %947 = shalt.err (!%p944_p10)
}
  0x66   : > { %s948_s7 = scalar_lea.vmem %s1380_s12, 2048  ;;  %s1119_s9 = smov [#allocation6]  }
  0x67   : > { %p949_p6 = scmp.ne.s32.totalorder %s1380_s12, %s948_s7  ;;  %s953_s8 = sshll.u32 %s1119_s9, 4  ;;  %s954_s8 = int_to_ptr.vmem [resolvable:$false] %s953_s8 }
  0x68   : > { %s955_s27 = scalar_lea.vmem %s954_s8, 4096  ;;  %p956_p13 = scmp.lt.s32.totalorder %s1380_s12, %s954_s8 }
  0x69   : > { %p951_p0 = pnand %p949_p6, %p935_p11  ;;  %p957_p4 = scmp.lt.s32.totalorder %s955_s27, %s948_s7 }
  0x6b   : > { %p952_p8 = pneg %p951_p0  ;;  %p958_p9 = por %p957_p4, %p956_p13 }
  0x6d   : > { %p959_p2 = pnand %p958_p9, %p952_p8 }
  0x6f   : > { %962 = shalt.err (!%p959_p2)
}
  0x70   : > { %s1632_s4 = smov 8   ;;  %s1633_s3 = smov 128  }
  0x71   : > { %s1634_s24 = smov 384   ;;  %275 = sbr.rel (%p1317_p7) target bundleno = 511 (0x1ff), region = 40 }
  0x72   : > { %775 = dma.hbm_to_vmem [thread:$0]  (!%p1375_p1), %s1385_s26, 2048, %s1380_s12, %s1387_s0, %s1634_s24, %s1633_s3, %s1632_s4  }
  0x73   : > { %s277_s21 = sand.u32 (!%p1317_p7), 1, %s1089_s25   ;;  %p1635_p13 = scmp.ne.s32.totalorder (!%p1317_p7), %s1616_s15, 0 }
  0x74   : > { %s1421_s9 = sshll.u32 (!%p1317_p7), %s277_s21, 4  ;;  %s278_s7 = scalar_lea.sflag (!%p1317_p7), [#allocation4], %s277_s21 }
  0x78   : > { %1048 = dma.done.wait (%p1635_p13), %s278_s7, 256  }
  0x79   : > { %1050 = vsyncadd (%p1635_p13), %s278_s7, 4294967040  ;;  %s286_s14 = sand.u32 1, %s1077_s22   ;;  %p1636_p7 = scmp.ne.s32.totalorder %s1624_s16, 0 }
  0x7a   : > { %s668_s26 = sshll.u32 %s286_s14, 7  ;;  %s287_s12 = scalar_lea.sflag [#allocation7], %s286_s14 }
  0x7b   : > { %s1429_s17 = scalar_lea.vmem [#allocation6], %s668_s26 }
  0x7c   : > { %1052 = dma.done.wait (%p1636_p7), %s287_s12, 2048  }
  0x7d   : > { %1054 = vsyncadd (%p1636_p7), %s287_s12, 4294965248  ;;  %s1602_s0 = sand.u32 1, %s1065_s19   ;;  %p332_p8 = scmp.lt.s32.totalorder %s1101_s28, 1 }
  0x7e   : > { %s669_s15 = sshll.u32 %s1602_s0, 4  ;;  %s1637_s7 = sld [smem:[#allocation20_spill]] }
  0x7f   : > { %s1440_s27 = scalar_select %p332_p8, %s1101_s28, 1 }
  0x80   : > { %s1638_s8 = sld [smem:[#allocation21_spill]]  ;;  %s1454_s30 = scalar_lea.vmem [#allocation8], %s669_s15 }
  0x81   : > { %s334_s24 = scalar_lea.vmem %s1584_s2, %s1440_s27  ;;  %s1639_s0 = sld [smem:[#allocation13_spill]] }
  0x84   : > { %s337_s14 = scalar_lea.vmem %s1637_s7, %s1440_s27 }
  0x86   : > { %s340_s1 = scalar_lea.vmem %s1638_s8, %s1440_s27 }
  0x87   : > { %p670_p10 = scmp.ne.s32.totalorder %s1639_s0, 0 }
  0x88   : > { %v1120_v0 = vmov (!%p670_p10), 0.0  }
  0x89   : > { %344 = sbr.rel (%p670_p10) target bundleno = 144 (0x90), region = 52  ;;  %345 = vst [vmem:[#allocation2] sm:$0xff] (!%p670_p10), %v1120_v0  ;;  %346 = vst [vmem:[#allocation2 + $0x8] sm:$0xff] (!%p670_p10), %v1120_v0 }
  0x90 PF: > { %v351_v1 = vld [vmem:[%s1429_s17] sm:$0xff]  ;;  %v352_v2 = vld [vmem:[%s1429_s17 + $0x8] sm:$0xff]  ;;  %v353_v3 = vld [vmem:[%s1429_s17 + $0x10] sm:$0xff]  ;;  %s1640_s8 = scalar_lea.vmem [#allocation3], %s1421_s9  ;;  %s1642_s15 = sld [smem:[#allocation13_spill]] }
  0x91   : > { %v730_v4 = vpack.c.bf16 %v352_v2, %v351_v1  ;;  %v354_v5 = vld [vmem:[%s1429_s17 + $0x18] sm:$0xff]  ;;  %v349_v7 = vld [vmem:[%s1640_s8] sm:$0xff]  ;;  %v356_v9 = vld [vmem:[%s1429_s17 + $0x28] sm:$0xff]  ;;  %s1641_s0 = smov %s1640_s8 }
  0x92   : > { %v734_v6 = vpack.c.bf16 %v354_v5, %v353_v3  ;;  %v355_v8 = vld [vmem:[%s1429_s17 + $0x20] sm:$0xff]  ;;  %727 = vmatprep.mubr.f32.mxu0 %v349_v7  ;;  %v357_v11 = vld [vmem:[%s1429_s17 + $0x30] sm:$0xff]  ;;  %v358_v12 = vld [vmem:[%s1429_s17 + $0x38] sm:$0xff] }
  0x93   : > { %731 = vmatprep.subr.bf16.mxu0 %v730_v4  ;;  %v738_v10 = vpack.c.bf16 %v356_v9, %v355_v8  ;;  %v742_v13 = vpack.c.bf16 %v358_v12, %v357_v11  ;;  %v359_v14 = vld [vmem:[%s1429_s17 + $0x40] sm:$0xff]  ;;  %v360_v15 = vld [vmem:[%s1429_s17 + $0x48] sm:$0xff]  ;;  %v361_v17 = vld [vmem:[%s1429_s17 + $0x50] sm:$0xff] }
  0x94   : > { %733 = vmatpush3.bf16.xpose.msra.mxu0 %v730_v4  ;;  %v746_v16 = vpack.c.bf16 %v360_v15, %v359_v14  ;;  %v362_v18 = vld [vmem:[%s1429_s17 + $0x58] sm:$0xff]  ;;  %v363_v20 = vld [vmem:[%s1429_s17 + $0x60] sm:$0xff]  ;;  %v364_v21 = vld [vmem:[%s1429_s17 + $0x68] sm:$0xff] }
  0x95   : > { %735 = vmatprep.subr.bf16.mxu0 %v734_v6  ;;  %v750_v19 = vpack.c.bf16 %v362_v18, %v361_v17  ;;  %v754_v22 = vpack.c.bf16 %v364_v21, %v363_v20  ;;  %v365_v23 = vld [vmem:[%s1429_s17 + $0x70] sm:$0xff]  ;;  %v366_v24 = vld [vmem:[%s1429_s17 + $0x78] sm:$0xff] }
  0x96   : > { %v758_v25 = vpack.c.bf16 %v366_v24, %v365_v23  ;;  %v350_v26 = vld [vmem:[%s1641_s0 + $0x8] sm:$0xff]  ;;  %v347_v28 = vld [vmem:[#allocation2] sm:$0xff]  ;;  %p671_p1 = scmp.ne.s32.totalorder %s1642_s15, 2 }
  0x97   : > { %v348_v27 = vld [vmem:[#allocation2 + $0x8] sm:$0xff]  ;;  %v672_v35 = vld [vmem:[%s334_s24] ss:$0 sm:$0xff] (!%p671_p1)  ;;  %v490_v60 = vlaneseq (!%p671_p1) }
  0x98   : > { %v484_v62 = vld [vmem:[%s337_s14] sm:$0x1] (!%p671_p1) }
  0x99   : > { %v491_v61 = vshrl.u32 (!%p671_p1), %v490_v60, 7  ;;  %v486_v2 = vld [vmem:[%s340_s1] sm:$0x1] (!%p671_p1) }
  0x9b   : > { %v492_v63 = vsub.s32 (!%p671_p1), 0, %v491_v61 }
  0x9c   : > { %737 = vmatpush3.bf16.xpose.msra.mxu0 %v734_v6 }
  0x9d   : > { %739 = vmatprep.subr.bf16.mxu0 %v738_v10 }
  0xa4   : > { %741 = vmatpush3.bf16.xpose.msra.mxu0 %v738_v10 }
  0xa5   : > { %743 = vmatprep.subr.bf16.mxu0 %v742_v13 }
  0xac   : > { %745 = vmatpush3.bf16.xpose.msra.mxu0 %v742_v13 }
  0xad   : > { %747 = vmatprep.subr.bf16.mxu0 %v746_v16 }
  0xb4   : > { %749 = vmatpush3.bf16.xpose.msra.mxu0 %v746_v16 }
  0xb5   : > { %751 = vmatprep.subr.bf16.mxu0 %v750_v19 }
  0xbc   : > { %753 = vmatpush3.bf16.xpose.msra.mxu0 %v750_v19 }
  0xbd   : > { %755 = vmatprep.subr.bf16.mxu0 %v754_v22 }
  0xc4   : > { %757 = vmatpush3.bf16.xpose.msra.mxu0 %v754_v22 }
  0xc5   : > { %759 = vmatprep.subr.bf16.mxu0 %v758_v25 }
  0xcc   : > { %761 = vmatpush3.bf16.xpose.msra.mxu0 %v758_v25 }
  0xd3   : > { %728 = vmatmul.mubr.f32.vlgmr.msra.gmra.mrb[0].mxu0 %v350_v26 }
 0x1a4   : > { %449 = sbr.rel (%p671_p1) target bundleno = 482 (0x1e2), region = 56 }
 0x1a6   : > { %v729_v29 = vpop.f32.mrb[0].mxu0 }
 0x1a7   : > { %v443_v30 = vadd.f32 %v729_v29, %v348_v27  ;;  %v433_v31 = vpop.f32.mrb[1].mxu0 }
 0x1a8   : > { %v442_v32 = vadd.f32 %v433_v31, %v347_v28 }
 0x1a9   : > { %445 = vst [vmem:[#allocation2 + $0x8] sm:$0xff] %v443_v30 }
 0x1aa   : > { %444 = vst [vmem:[#allocation2] sm:$0xff] %v442_v32 }
 0x1b0   : > { %v451_v34 = vld [vmem:[#allocation2 + $0x8] sm:$0xff] }
 0x1b1   : > { %v450_v33 = vld [vmem:[#allocation2] sm:$0xff]  ;;  %v460_v37 = vadd.f32 %v672_v35, %v451_v34 }
 0x1b2   : > { %v459_v36 = vadd.f32 %v672_v35, %v450_v33 }
 0x1b3   : > { %v469_v40 = vmul.f32 %v460_v37, %v460_v37 }
 0x1b4   : > { %v461_v38 = vadd.f32 %v460_v37, %v459_v36  ;;  %v468_v39 = vmul.f32 %v459_v36, %v459_v36 }
 0x1b6   : > { %v462_v41 = vrot.slane %v461_v38, 4  ;;  %v470_v42 = vadd.f32 %v469_v40, %v468_v39 }
 0x1b8   : > { %v463_v43 = vadd.f32 %v462_v41, %v461_v38  ;;  %v471_v44 = vrot.slane %v470_v42, 4 }
 0x1ba   : > { %v464_v45 = vrot.slane %v463_v43, 2  ;;  %v472_v46 = vadd.f32 %v471_v44, %v470_v42 }
 0x1bc   : > { %v465_v47 = vadd.f32 %v464_v45, %v463_v43  ;;  %v473_v48 = vrot.slane %v472_v46, 2 }
 0x1be   : > { %v466_v49 = vrot.slane %v465_v47, 1  ;;  %v474_v50 = vadd.f32 %v473_v48, %v472_v46 }
 0x1c0   : > { %v467_v51 = vadd.f32 %v466_v49, %v465_v47  ;;  %v475_v52 = vrot.slane %v474_v50, 1 }
 0x1c2   : > { %v476_v53 = vadd.f32 %v475_v52, %v474_v50  ;;  %v477_v54 = vmul.f32 0.0625, %v467_v51 }
 0x1c4   : > { %v478_v55 = vmul.f32 0.0625, %v476_v53  ;;  %v479_v56 = vmul.f32 %v477_v54, %v477_v54 }
 0x1c6   : > { %v480_v57 = vsub.f32 %v478_v55, %v479_v56 }
 0x1c8   : > { %v481_v58 = vmax.f32 %v480_v57, 0.0 }
 0x1ca   : > { %v482_v59 = vadd.f32 1e-05, %v481_v58 }
 0x1cc   : > { %901 = vrsqrt.f32 %v482_v59 }
 0x1d6   : > { %v902_v0 = vpop.eup %901 }
 0x1d7   : > { %v485_v1 = vmul.f32 %v902_v0, %v484_v62 }
 0x1d9   : > { %v487_v3 = vmul.f32 %v485_v1, %v477_v54  ;;  %v493_v4 = vrot.slane %v485_v1, %v492_v63 }
 0x1db   : > { %v488_v5 = vsub.f32 %v486_v2, %v487_v3  ;;  %v495_v6 = vmul.f32 %v493_v4, %v459_v36  ;;  %v496_v7 = vmul.f32 %v493_v4, %v460_v37 }
 0x1dd   : > { %v501_v8 = vrot.slane %v488_v5, %v492_v63 }
 0x1df   : > { %v503_v9 = vadd.f32 %v501_v8, %v495_v6  ;;  %v504_v10 = vadd.f32 %v501_v8, %v496_v7 }
 0x1e1   : > { %505 = vst [vmem:[%s1454_s30] sm:$0xff] %v503_v9  ;;  %506 = vst [vmem:[%s1454_s30 + $0x8] sm:$0xff] %v504_v10 }
 0x1e2 PF: > { %s674_s14 = sshll.u32 %s1101_s28, 7  ;;  %s1645_s27 = sld [smem:[#allocation22_spill]] }
 0x1e3   : > { %s520_s0 = sshll.u32 %s1454_s30, 4  ;;  %s1647_s15 = sand.u32 1, %s1065_s19   ;;  %s1502_s0 = int_to_ptr.vmem [resolvable:$true] %s520_s0 }
 0x1e4   : > { %s1506_s17 = scalar_lea.sflag [#allocation5], %s1647_s15  ;;  %s963_s4 = scalar_lea.vmem %s1502_s0, 256 }
 0x1e5   : > { %p964_p11 = scmp.ne.s32.totalorder %s1502_s0, %s963_s4  ;;  %p1648_p3 = scmp.ne.s32.totalorder %s1627_s13, 0 }
 0x1e6   : > { %s1121_s28 = smov [#allocation8]  }
 0x1e7   : > { %p965_p5 = pnand %p964_p11, %p1648_p3  ;;  %s967_s9 = sshll.u32 %s1121_s28, 4  ;;  %s968_s9 = int_to_ptr.vmem [resolvable:$false] %s967_s9 }
 0x1e8   : > { %s1646_s8 = smov %s1645_s27  ;;  %s1499_s1 = scalar_lea.hbm %s1645_s27, %s674_s14 }
 0x1e9   : > { %p966_p12 = pneg %p965_p5  ;;  %s969_s3 = scalar_lea.vmem %s968_s9, 512 }
 0x1ea   : > { %p970_p6 = scmp.lt.s32.totalorder %s1502_s0, %s968_s9  ;;  %p971_p0 = scmp.lt.s32.totalorder %s969_s3, %s963_s4 }
 0x1ec   : > { %p972_p4 = por %p971_p0, %p970_p6 }
 0x1ee   : > { %p973_p9 = pnand %p972_p4, %p966_p12 }
 0x1f0   : > { %976 = shalt.err (!%p973_p9)
}
 0x1f1   : > { %s977_s30 = scalar_lea.hbm %s1499_s1, 256  ;;  %s981_s16 = scalar_lea.hbm %s1646_s8, 512 }
 0x1f2   : > { %p978_p2 = scmp.ne.s32.totalorder %s1499_s1, %s977_s30  ;;  %p982_p8 = scmp.lt.u32.totalorder %s1499_s1, %s1646_s8 }
 0x1f3   : > { %p983_p10 = scmp.lt.u32.totalorder %s981_s16, %s977_s30  ;;  %p985_p11 = scmp.lt.u32.totalorder %s977_s30, %s1499_s1 }
 0x1f4   : > { %p979_p13 = pnand %p978_p2, %p1648_p3 }
 0x1f5   : > { %p984_p1 = por %p983_p10, %p982_p8 }
 0x1f6   : > { %p980_p7 = pneg %p979_p13 }
 0x1f7   : > { %p986_p5 = por %p985_p11, %p984_p1 }
 0x1f9   : > { %p987_p12 = pnand %p986_p5, %p980_p7 }
 0x1fb   : > { %990 = shalt.err (!%p987_p12)
}
 0x1fc   : > { %s1122_s26 = smov 128   ;;  %s1123_s12 = smov 256  }
 0x1fd   : > { %s1124_s27 = smov 8  }
 0x1fe   : > { %767 = dma.vmem_to_hbm [thread:$0]  (%p1648_p3), %s1502_s0, 256, %s1499_s1, %s1506_s17, %s1122_s26, %s1123_s12, %s1124_s27  }
 0x1ff PF: > { %p781_p6 = scmp.ge.s32.totalorder %s1113_s6, 2  ;;  %s535_s15 = sand.u32 1, %s1061_s18  }
 0x200   : > { %p1649_p0 = scmp.ne.s32.totalorder %s1628_s11, 0  ;;  %s536_s4 = scalar_lea.sflag [#allocation5], %s535_s15 }
 0x202   : > { %p777_p4 = pnand %p781_p6, %p1649_p0 }
 0x204   : > { %1056 = dma.done.wait (!%p777_p4), %s536_s4, 256  }
 0x205   : > { %1058 = vsyncadd (!%p777_p4), %s536_s4, 4294967040  ;;  %s24_s6 = sadd.s32 1, %s1113_s6   ;;  %s1651_s13 = sld [smem:[#allocation12_spill]] }
 0x206   : > { %p1535_p9 = scmp.ge.s32.totalorder %s24_s6, 8   ;;  %s1652_s26 = sld [smem:[#allocation16_spill]] }
 0x207   : > { %s1653_s11 = sld [smem:[#allocation14_spill]]  ;;  %s1654_s1 = sld [smem:[#allocation15_spill]] }
 0x208   : > { %s1655_s30 = sld [smem:[#allocation17_spill]]  ;;  %s1657_s18 = smov %s1065_s19 }
 0x209   : > { %s1658_s19 = smov %s1069_s20  ;;  %s1659_s20 = smov %s1360_s10 }
 0x20a   : > { %s1660_s21 = smov %s1077_s22  ;;  %s1661_s22 = smov %s1081_s23 }
 0x20b   : > { %s1662_s23 = smov %s1363_s5  ;;  %s1663_s24 = smov %s1089_s25 }
 0x20c   : > { %s1664_s25 = smov %s1651_s13  ;;  %s1665_s27 = smov %s1105_s29 }
 0x20d   : > { %s1666_s28 = smov %s1653_s11  ;;  %s1667_s29 = smov %s1654_s1 }
 0x20e   :  { %23 = sbr.rel (!%p1535_p9) target bundleno = 18 (0x12), region = 115 }
 0x215   :  { %541 = vsyncpa [#allocation4], 1 }
 0x216   :  { %543 = vsyncpa [#allocation4 + $0x1], 1 }
 0x217   :  { %544 = vsyncpa [#allocation7], 1 }
 0x218   :  { %546 = vsyncpa [#allocation7 + $0x1], 1 }
 0x219   :  { %547 = vsyncpa [#allocation5], 1 }
 0x21a   :  { %549 = vsyncpa [#allocation5 + $0x1], 1 }

</bundles_post_ra>
